<compile_context>
chip_gen: v7x
topology: tpu7x:2x2x1
jax: 0.10.0
libtpu: 0.0.40
codegen_flags: <defaults>
</compile_context>

<pallas_src>
import jax
import jax.numpy as jnp
from jax.experimental import pallas as pl
from jax.experimental.pallas import tpu as pltpu


def _round_up(x, m):
    return ((x + m - 1) // m) * m


def _mlp_kernel(x_ref, w1_ref, b1_ref, w2_ref, b2_ref, o_ref):
    # x_ref : (1, TILE_N)                batch in lanes
    # w1_ref: (H, 1), b1_ref: (H, 1), w2_ref: (H, 1)   hidden in sublanes
    # b2_ref: (1, 1)                     scalar, SMEM
    x = x_ref[...]                                        # (1, TILE_N)
    # Layer 1: Linear(1, H) + ReLU == outer product on the VPU (no MXU).
    h = jnp.maximum(w1_ref[...] * x + b1_ref[...], 0.0)   # (H, TILE_N)
    # Layer 2: Linear(H, 1) == weighted sublane reduction (XLU).
    y = jnp.sum(h * w2_ref[...], axis=0, keepdims=True)   # (1, TILE_N)
    o_ref[...] = (y + b2_ref[0, 0]).astype(o_ref.dtype)   # scalar bias from SMEM


def nnet_regression_forward(x, w1, b1, w2, b2, *, tile_n=512):
    """Fused forward pass of NNetRegression (in_size == out_size == 1).

    x : (N, 1) float32        -- the 'age' column
    w1: (1, H), b1: (1, H)    -- first nn.Linear (stored as (in, out))
    w2: (H, 1), b2: (1, 1)    -- second nn.Linear (stored as (in, out))
    returns (N, 1) float32    -- same as the PyTorch module
    """
    n, in_size = x.shape
    hidden = w1.shape[1]
    out_size = w2.shape[1]
    assert in_size == 1 and out_size == 1, "kernel specialized for scalar regression"

    # Lane-dense batch tiling (lane dim must be a multiple of 128).
    tile_n = min(tile_n, _round_up(n, 128))
    n_pad = _round_up(n, tile_n)

    # Re-layout: batch -> lanes, hidden -> sublanes.
    x_lanes = jnp.zeros((1, n_pad), x.dtype).at[0, :n].set(x[:, 0])
    w1_c = w1.T                 # (H, 1)
    b1_c = b1.T                 # (H, 1)
    w2_c = w2                   # (H, 1)
    b2_c = b2.reshape(1, 1)     # (1, 1) scalar for SMEM

    grid = (n_pad // tile_n,)

    out = pl.pallas_call(
        _mlp_kernel,
        out_shape=jax.ShapeDtypeStruct((1, n_pad), jnp.float32),
        grid=grid,
        in_specs=[
            pl.BlockSpec((1, tile_n), lambda i: (0, i)),           # x batch tile
            pl.BlockSpec((hidden, 1), lambda i: (0, 0)),           # w1, resident
            pl.BlockSpec((hidden, 1), lambda i: (0, 0)),           # b1, resident
            pl.BlockSpec((hidden, 1), lambda i: (0, 0)),           # w2, resident
            pl.BlockSpec((1, 1), lambda i: (0, 0),
                         memory_space=pltpu.SMEM),                 # b2 scalar
        ],
        out_specs=pl.BlockSpec((1, tile_n), lambda i: (0, i)),
        compiler_params=pltpu.CompilerParams(
            dimension_semantics=("parallel",),     # batch axis: megacore / 2-TC split
            vmem_limit_bytes=32 * 1024 * 1024,     # safe on v7x's smaller VMEM
        ),
    )(x_lanes, w1_c, b1_c, w2_c, b2_c)

    # Drop batch padding and restore the PyTorch (N, 1) output layout.
    return out[0, :n][:, None]


def _reference_forward(x, w1, b1, w2, b2):
    h = jnp.maximum(x @ w1 + b1, 0.0)
    return h @ w2 + b2


if __name__ == "__main__":
    # Module config implied by the script: in_size=1 (the 'age' column),
    # small hidden width, scalar regression output.
    in_size, hidden_size, out_size = 1, 32, 1

    key = jax.random.PRNGKey(0)
    k_x, k_w1, k_b1, k_w2, k_b2 = jax.random.split(key, 5)

    # Deterministic parameter init (shapes match the nn.Linear layers).
    w1 = jax.random.normal(k_w1, (in_size, hidden_size), jnp.float32) * 0.1
    b1 = jax.random.normal(k_b1, (1, hidden_size), jnp.float32) * 0.1
    w2 = jax.random.normal(k_w2, (hidden_size, out_size), jnp.float32) * 0.1
    b2 = jax.random.normal(k_b2, (1, out_size), jnp.float32) * 0.1

    # Small case (matches the spec's tiny dataset) + a multi-tile case that
    # exercises the batch grid and the padding path.
    for batch in (8, 1000):
        x = jax.random.uniform(k_x, (batch, in_size), jnp.float32, 18.0, 65.0)

        out = nnet_regression_forward(x, w1, b1, w2, b2)
        jax.block_until_ready(out)

        ref = _reference_forward(x, w1, b1, w2, b2)
        assert out.shape == (batch, out_size)
        assert jnp.allclose(out, ref, atol=1e-4, rtol=1e-4)

    print("KERNEL_OK")
</pallas_src>

<mosaic_0001>
module attributes {stable_mosaic.version = 11 : i64} {
  func.func @_mlp_kernel(%arg0: i32, %arg1: memref<1x128xf32, #tpu.memory_space<vmem>>, %arg2: memref<32x1xf32, #tpu.memory_space<vmem>>, %arg3: memref<32x1xf32, #tpu.memory_space<vmem>>, %arg4: memref<32x1xf32, #tpu.memory_space<vmem>>, %arg5: memref<1x1xf32, #tpu.memory_space<smem>>, %arg6: memref<1x128xf32, #tpu.memory_space<vmem>>) attributes {dimension_semantics = [#tpu.dimension_semantics<parallel>], iteration_bounds = array<i64: 1>, scalar_prefetch = 0 : i64, scratch_operands = 0 : i64, tpu.core_type = #tpu.core_type<tc>, window_params = [{transform_indices = @transform_0, window_bounds = array<i64: 1, 128>}, {pipeline_mode = #tpu.pipeline_mode<synchronous>, transform_indices = @transform_1, window_bounds = array<i64: 32, 1>}, {pipeline_mode = #tpu.pipeline_mode<synchronous>, transform_indices = @transform_2, window_bounds = array<i64: 32, 1>}, {pipeline_mode = #tpu.pipeline_mode<synchronous>, transform_indices = @transform_3, window_bounds = array<i64: 32, 1>}, {transform_indices = @transform_4, window_bounds = array<i64: 1, 1>}, {transform_indices = @transform_5, window_bounds = array<i64: 1, 128>}]} {
    %c0 = arith.constant 0 : index
    %c0_0 = arith.constant 0 : index
    %0 = vector.load %arg1[%c0, %c0_0] : memref<1x128xf32, #tpu.memory_space<vmem>>, vector<1x128xf32>
    %c0_1 = arith.constant 0 : index
    %c0_2 = arith.constant 0 : index
    %1 = vector.load %arg2[%c0_1, %c0_2] : memref<32x1xf32, #tpu.memory_space<vmem>>, vector<32x1xf32>
    %2 = vector.broadcast %1 : vector<32x1xf32> to vector<32x128xf32>
    %3 = vector.broadcast %0 : vector<1x128xf32> to vector<32x128xf32>
    %4 = arith.mulf %2, %3 : vector<32x128xf32>
    %c0_3 = arith.constant 0 : index
    %c0_4 = arith.constant 0 : index
    %5 = vector.load %arg3[%c0_3, %c0_4] : memref<32x1xf32, #tpu.memory_space<vmem>>, vector<32x1xf32>
    %6 = vector.broadcast %5 : vector<32x1xf32> to vector<32x128xf32>
    %7 = arith.addf %4, %6 : vector<32x128xf32>
    %cst = arith.constant 0.000000e+00 : f32
    %8 = vector.broadcast %cst : f32 to vector<32x128xf32>
    %9 = arith.maximumf %7, %8 : vector<32x128xf32>
    %c0_5 = arith.constant 0 : index
    %c0_6 = arith.constant 0 : index
    %10 = vector.load %arg4[%c0_5, %c0_6] : memref<32x1xf32, #tpu.memory_space<vmem>>, vector<32x1xf32>
    %11 = vector.broadcast %10 : vector<32x1xf32> to vector<32x128xf32>
    %12 = arith.mulf %9, %11 : vector<32x128xf32>
    %cst_7 = arith.constant dense<0.000000e+00> : vector<128xf32>
    %13 = vector.multi_reduction <add>, %12, %cst_7 [0] : vector<32x128xf32> to vector<128xf32>
    %14 = vector.shape_cast %13 : vector<128xf32> to vector<1x128xf32>
    %c0_8 = arith.constant 0 : index
    %c0_9 = arith.constant 0 : index
    %15 = memref.load %arg5[%c0_8, %c0_9] : memref<1x1xf32, #tpu.memory_space<smem>>
    %16 = vector.broadcast %15 : f32 to vector<1x128xf32>
    %17 = arith.addf %14, %16 : vector<1x128xf32>
    %c0_10 = arith.constant 0 : index
    %c0_11 = arith.constant 0 : index
    %18 = vector.load %arg6[%c0_10, %c0_11] : memref<1x128xf32, #tpu.memory_space<vmem>>, vector<1x128xf32>
    tpu.vector_store %arg6[%c0_10, %c0_11], %17 {strides = array<i32>} : memref<1x128xf32, #tpu.memory_space<vmem>>, vector<1x128xf32>,
    return
  }
  func.func @transform_0(%arg0: i32) -> (i32, i32) {
    %c0_i32 = arith.constant 0 : i32
    %c0_i32_0 = arith.constant 0 : i32
    return %c0_i32, %arg0 : i32, i32
  }
  func.func @transform_1(%arg0: i32) -> (i32, i32) {
    %c0_i32 = arith.constant 0 : i32
    %c0_i32_0 = arith.constant 0 : i32
    %c0_i32_1 = arith.constant 0 : i32
    return %c0_i32, %c0_i32_0 : i32, i32
  }
  func.func @transform_2(%arg0: i32) -> (i32, i32) {
    %c0_i32 = arith.constant 0 : i32
    %c0_i32_0 = arith.constant 0 : i32
    %c0_i32_1 = arith.constant 0 : i32
    return %c0_i32, %c0_i32_0 : i32, i32
  }
  func.func @transform_3(%arg0: i32) -> (i32, i32) {
    %c0_i32 = arith.constant 0 : i32
    %c0_i32_0 = arith.constant 0 : i32
    %c0_i32_1 = arith.constant 0 : i32
    return %c0_i32, %c0_i32_0 : i32, i32
  }
  func.func @transform_4(%arg0: i32) -> (i32, i32) {
    %c0_i32 = arith.constant 0 : i32
    %c0_i32_0 = arith.constant 0 : i32
    %c0_i32_1 = arith.constant 0 : i32
    return %c0_i32, %c0_i32_0 : i32, i32
  }
  func.func @transform_5(%arg0: i32) -> (i32, i32) {
    %c0_i32 = arith.constant 0 : i32
    %c0_i32_0 = arith.constant 0 : i32
    return %c0_i32, %arg0 : i32, i32
  }
}

</mosaic_0001>

<bundles_post_ra>
// kernel: tpu_custom_call.1
= control target key start
LH: loop header
LB: loop body
LE: loop exit
PB: predicated region body
PF: predicated region fallthrough
CT: control target
= control target key end

     0   :  { %v173_v2 = vmov 0   ;;  %s259_s0 = inlined_call_operand.vmem [shape: f32[1,128], index: 0, kind: input, shape index: {}]   ;;  %s260_s1 = inlined_call_operand.vmem [shape: f32[32,1], index: 1, kind: input, shape index: {}]   ;;  %s261_s2 = inlined_call_operand.vmem [shape: f32[32,1], index: 2, kind: input, shape index: {}]   ;;  %s262_s3 = inlined_call_operand.vmem [shape: f32[32,1], index: 3, kind: input, shape index: {}]   ;;  %s263_s4 = inlined_call_operand.<no memory space> [shape: f32[1,1], index: 4, kind: input, shape index: {}]   ;;  %s264_s5 = inlined_call_operand.hbm [shape: f32[1,128], index: 5, kind: output, shape index: {}]  }
   0x1   :  { %v25_v0 = vld [vmem:[%s260_s1 + $0x10] sm:$0xff]  ;;  %v23_v1 = vld [vmem:[%s260_s1] sm:$0xff]  ;;  %148 = vset.pattern.permute.xlu1 %v173_v2  ;;  %147 = vset.pattern.permute.xlu0 %v173_v2  ;;  %v24_v4 = vld [vmem:[%s260_s1 + $0x8] sm:$0xff] }
   0x2   :  { %39 = vperm.xlu1 %148, %v25_v0   ;;  %29 = vperm.xlu0 %147, %v23_v1   ;;  %v57_v3 = vld [vmem:[%s261_s2] sm:$0xff] }
   0x3   :  { %11 = vsyncpa [#allocation4], 0  ;;  %v26_v5 = vld [vmem:[%s260_s1 + $0x18] sm:$0xff]  ;;  %v58_v6 = vld [vmem:[%s261_s2 + $0x8] sm:$0xff]  ;;  %v127_v50 = vstv %s263_s4  ;;  %s174_s17 = smov [#allocation3]  }
   0x4   :  { %v60_v7 = vld [vmem:[%s261_s2 + $0x18] sm:$0xff]  ;;  %v59_v8 = vld [vmem:[%s261_s2 + $0x10] sm:$0xff]  ;;  %v90_v9 = vld [vmem:[%s262_s3 + $0x8] sm:$0xff]  ;;  %s136_s18 = sshll.u32 %s174_s17, 4  ;;  %s137_s18 = int_to_ptr.vmem [resolvable:$true] %s136_s18 }
   0x5   :  { %v89_v10 = vld [vmem:[%s262_s3] sm:$0xff]  ;;  %v92_v11 = vld [vmem:[%s262_s3 + $0x18] sm:$0xff]  ;;  %v91_v12 = vld [vmem:[%s262_s3 + $0x10] sm:$0xff]  ;;  %s149_s19 = scalar_lea.vmem %s137_s18, 16  ;;  %s153_s20 = scalar_lea.vmem %s137_s18, 32 }
   0x6   :  { %63 = vperm.xlu1 %148, %v57_v3   ;;  %34 = vperm.xlu0 %147, %v24_v4   ;;  %v144_v17 = vld [vmem:[%s259_s0] ss:$0 sm:$0xff]  ;;  %p150_p0 = scmp.ne.s32.totalorder %s137_s18, %s149_s19  ;;  %p154_p1 = scmp.lt.s32.totalorder %s137_s18, %s137_s18 }
   0x7   :  { %p155_p2 = scmp.lt.s32.totalorder %s153_s20, %s149_s19 }
   0x9   :  { %p156_p3 = por %p155_p2, %p154_p1 }
   0xa   :  { %44 = vperm.xlu1 %148, %v26_v5   ;;  %68 = vperm.xlu0 %147, %v58_v6  }
   0xb   :  { %p157_p4 = pnand %p156_p3, %p150_p0 }
   0xe   :  { %78 = vperm.xlu1 %148, %v60_v7   ;;  %73 = vperm.xlu0 %147, %v59_v8  }
  0x12   :  { %100 = vperm.xlu1 %148, %v90_v9   ;;  %95 = vperm.xlu0 %147, %v89_v10  }
  0x16   :  { %110 = vperm.xlu1 %148, %v92_v11   ;;  %105 = vperm.xlu0 %147, %v91_v12  }
  0x81   :  { %v40_v13 = vpop.permute.xlu1 %39  ;;  %v30_v14 = vpop.permute.xlu0 %29 }
  0x82   :  { %v53_v20 = vmul.f32 %v144_v17, %v30_v14  ;;  %v55_v26 = vmul.f32 %v144_v17, %v40_v13 }
  0x85   :  { %v64_v15 = vpop.permute.xlu1 %63  ;;  %v35_v16 = vpop.permute.xlu0 %34 }
  0x86   :  { %v54_v21 = vmul.f32 %v144_v17, %v35_v16  ;;  %v81_v22 = vadd.f32 %v64_v15, %v53_v20 }
  0x88   :  { %v85_v27 = vmax.f32 %v81_v22, 0.0 }
  0x89   :  { %v45_v18 = vpop.permute.xlu1 %44  ;;  %v69_v19 = vpop.permute.xlu0 %68 }
  0x8a   :  { %v82_v23 = vadd.f32 %v69_v19, %v54_v21  ;;  %v56_v28 = vmul.f32 %v144_v17, %v45_v18 }
  0x8c   :  { %v86_v29 = vmax.f32 %v82_v23, 0.0 }
  0x8d   :  { %v79_v24 = vpop.permute.xlu1 %78  ;;  %v74_v25 = vpop.permute.xlu0 %73 }
  0x8e   :  { %v83_v30 = vadd.f32 %v74_v25, %v55_v26  ;;  %v84_v33 = vadd.f32 %v79_v24, %v56_v28 }
  0x90   :  { %v87_v36 = vmax.f32 %v83_v30, 0.0  ;;  %v88_v39 = vmax.f32 %v84_v33, 0.0 }
  0x91   :  { %v101_v31 = vpop.permute.xlu1 %100  ;;  %v96_v32 = vpop.permute.xlu0 %95 }
  0x92   :  { %v114_v34 = vmul.f32 %v101_v31, %v86_v29  ;;  %v113_v35 = vmul.f32 %v96_v32, %v85_v27 }
  0x94   :  { %v117_v40 = vadd.f32 %v114_v34, %v113_v35 }
  0x95   :  { %v111_v37 = vpop.permute.xlu1 %110  ;;  %v106_v38 = vpop.permute.xlu0 %105 }
  0x96   :  { %v115_v41 = vmul.f32 %v106_v38, %v87_v36  ;;  %v116_v42 = vmul.f32 %v111_v37, %v88_v39 }
  0x98   :  { %v118_v43 = vadd.f32 %v117_v40, %v115_v41 }
  0x9a   :  { %v119_v44 = vadd.f32 %v118_v43, %v116_v42 }
  0x9c   :  { %v120_v45 = vrot.slane %v119_v44, 4 }
  0x9e   :  { %v121_v46 = vadd.f32 %v120_v45, %v119_v44 }
  0xa0   :  { %v122_v47 = vrot.slane %v121_v46, 2 }
  0xa2   :  { %v123_v48 = vadd.f32 %v122_v47, %v121_v46 }
  0xa4   :  { %v124_v49 = vrot.slane %v123_v48, 1 }
  0xa6   :  { %v125_v51 = vadd.f32 %v124_v49, %v123_v48 }
  0xa8   :  { %v128_v52 = vadd.f32 %v127_v50, %v125_v51 }
  0xaa   :  { %129 = vst [vmem:[#allocation3] sm:$0x1] %v128_v52 }
  0xab   :  { %160 = shalt.err (!%p157_p4)
}
  0xac   :  { %s161_s23 = scalar_lea.hbm %s264_s5, 16 }
  0xad   :  { %p162_p5 = scmp.ne.s32.totalorder %s264_s5, %s161_s23  ;;  %p165_p6 = scmp.lt.u32.totalorder %s161_s23, %s264_s5 }
  0xaf   :  { %p167_p7 = pnand %p165_p6, %p162_p5 }
  0xb1   :  { %170 = shalt.err (!%p167_p7)
}
  0xb2   :  { %139 = dma.vmem_to_hbm [thread:$0]  %s137_s18, 16, %s264_s5, [#allocation4]  }
  0xb3   :  { %171 = dma.done.wait [#allocation4], 16  }
  0xb4   :  { %172 = vsyncadd [#allocation4], 4294967280 }
  0xb5   :  { %143 = vsyncpa [#allocation4], 1 }

</bundles_post_ra>
